<compile_context>
chip_gen: v5e
topology: v5e:2x2
jax: 0.10.0
libtpu: 0.0.40
codegen_flags: <defaults>
</compile_context>

<pallas_src>
import functools
import math

import jax
import jax.numpy as jnp
from jax import lax
from jax.experimental import pallas as pl
from jax.experimental.pallas import tpu as pltpu


def _vmem_capacity_bytes():
    """Best-effort per-core VMEM capacity; conservative (v7x, 64 MiB) fallback."""
    try:
        info = pltpu.get_tpu_info()
        for attr in ("vmem_capacity_bytes", "vmem_bytes", "vmem_size_bytes"):
            v = getattr(info, attr, None)
            if v:
                return int(v)
    except Exception:
        pass
    return 64 * 1024 * 1024


def _decoder_kernel(mix_ref, mask_ref, w_ref, b_ref, out_ref, carry_ref, *, T_total):
    # mix_ref  : (N, TI)         current T-tile of mixture_w[b]
    # mask_ref : (C, N, TI)      current T-tile of est_mask[b]
    # w_ref    : (L, N)          Linear weight
    # b_ref    : (L, 1)          Linear bias
    # out_ref  : (C, half, TO)   output chunks, chunk axis on lanes (lane-dense)
    #                            TO == TI (tiled) or TO == TI + 1 (single tile)
    # carry_ref: (C, half, 1)    second half-frame of the last frame of the
    #                            previous T-tile (VMEM scratch, persists over j)
    C, N, TI = mask_ref.shape
    L = w_ref.shape[0]
    half = L // 2
    TO = out_ref.shape[2]
    j = pl.program_id(1)

    @pl.when(j == 0)
    def _():  # new batch item -> no half-frame carried in from the left
        carry_ref[...] = jnp.zeros_like(carry_ref)

    w = w_ref[...].astype(jnp.float32)            # (L, N)
    b = b_ref[...].astype(jnp.float32)            # (L, 1)
    b_first, b_second = b[:half, :], b[half:, :]  # (half, 1) each

    base = j * TI
    # frame validity over this tile's TI input lanes (handles the ragged last
    # tile and the pure-tail tile that only emits the final carry chunk).
    frame_valid = (base + lax.broadcasted_iota(jnp.int32, (1, TI), 1)) < T_total

    # per-output-chunk bias, computed once per tile (hoisted out of the c loop):
    #   chunk k gets b[:half] iff a frame starts there (k < T),
    #   and b[half:]  iff a frame ends there (1 <= k <= T).
    k_idx = base + lax.broadcasted_iota(jnp.int32, (1, TO), 1)
    bias_blk = (jnp.where(k_idx < T_total, b_first, 0.0)
                + jnp.where((k_idx >= 1) & (k_idx <= T_total), b_second, 0.0))  # (half, TO)

    mix = mix_ref[...].astype(jnp.float32)        # (N, TI)
    zcol = jnp.zeros((half, 1), jnp.float32)

    # C (= nspk) is small & static -> unroll; each matmul stays transpose-free.
    for c in range(C):
        src = mask_ref[c].astype(jnp.float32) * mix                        # (N, TI)  VPU
        frames = jnp.dot(w, src, preferred_element_type=jnp.float32)       # (L, TI)  MXU
        # kill ragged-tile lanes (also guards against NaN/Inf padding garbage)
        frames = jnp.where(frame_valid, frames, 0.0)
        first, second = frames[:half, :], frames[half:, :]                 # (half, TI)
        prev = carry_ref[c]                                                # (half, 1)
        if TO == TI:
            # tiled regime: chunk i = first[i] + (carry if i==0 else second[i-1])
            acc = first + jnp.concatenate([prev, second[:, : TI - 1]], axis=1)
        else:
            # single-tile regime (TO == TI + 1): also emit the trailing chunk
            acc = (jnp.concatenate([first, zcol], axis=1)
                   + jnp.concatenate([prev, second], axis=1))
        out_ref[c] = (acc + bias_blk).astype(out_ref.dtype)
        carry_ref[c] = second[:, TI - 1:]                                  # carry to tile j+1


def decoder_forward(mixture_w, est_mask, weight, bias, basic_signal, *, t_tile=None):
    """mixture_w: [B,N,T], est_mask: [B,C,N,T] -> [B, C, (T-1)*L//2 + L]."""
    B, N, T = mixture_w.shape
    Bm, C, Nm, Tm = est_mask.shape
    assert (B, N, T) == (Bm, Nm, Tm)
    L = int(basic_signal)
    assert weight.shape == (L, N)
    assert L % 2 == 0, "overlap_and_add with hop L//2 requires an even frame length"
    half = L // 2
    out_size = (T + 1) * half          # == (T - 1) * half + L

    bias2d = bias.reshape(L, 1)
    mask_isz = est_mask.dtype.itemsize
    mix_isz = mixture_w.dtype.itemsize

    # --- generation-aware VMEM budget (85% of per-core capacity as hard cap) ---
    usable = int(_vmem_capacity_bytes() * 0.85)

    if t_tile is None:
        # bytes per T lane, double-buffered blocks; keep per-step blocks <~1/4 cap
        per_lane = 2 * (C * N * mask_isz + N * mix_isz + C * half * 4)
        t_tile = (usable // 4) // max(per_lane, 1)
        t_tile = max(512, min(8192, (t_tile // 128) * 128))
    else:
        t_tile = int(t_tile)
        assert t_tile % 128 == 0

    if T + 1 <= t_tile:
        # single T-tile: full-extent blocks (always legal block shapes)
        TI, TO, num_t = T, T + 1, 1
    else:
        TI = TO = t_tile
        num_t = -(-(T + 1) // t_tile)          # output needs T+1 chunks
    n_in_blocks = max(1, -(-T // TI))          # real input tiles along T

    blk_bytes = 2 * (TI * (C * N * mask_isz + N * mix_isz) + TO * C * half * 4)
    fixed = 2 * (L * N + L) * weight.dtype.itemsize + C * half * 128 * 4
    vmem_limit = int(min(usable, max(blk_bytes + fixed + (4 << 20), 32 << 20)))

    # input T-block index is clamped: the tail output tile (when it exists)
    # re-reads the last real block but masks every frame off in-kernel.
    in_idx3 = lambda b, j: (b, 0, jnp.minimum(j, n_in_blocks - 1))
    in_idx4 = lambda b, j: (b, 0, 0, jnp.minimum(j, n_in_blocks - 1))

    out_chunks = pl.pallas_call(
        functools.partial(_decoder_kernel, T_total=T),
        out_shape=jax.ShapeDtypeStruct((B, C, half, T + 1), jnp.float32),
        grid_spec=pltpu.PrefetchScalarGridSpec(
            num_scalar_prefetch=0,
            grid=(B, num_t),
            in_specs=[
                pl.BlockSpec((None, N, TI), in_idx3),           # mixture_w
                pl.BlockSpec((None, C, N, TI), in_idx4),        # est_mask
                pl.BlockSpec((L, N), lambda b, j: (0, 0)),      # weight (resident)
                pl.BlockSpec((L, 1), lambda b, j: (0, 0)),      # bias   (resident)
            ],
            out_specs=pl.BlockSpec((None, C, half, TO), lambda b, j: (b, 0, 0, j)),
            scratch_shapes=[pltpu.VMEM((C, half, 1), jnp.float32)],  # half-frame carry
        ),
        compiler_params=pltpu.CompilerParams(
            dimension_semantics=("parallel", "arbitrary"),
            vmem_limit_bytes=vmem_limit,
        ),
    )(mixture_w, est_mask, weight, bias2d)

    # glue: [B, C, half, T+1] -> [B, C, T+1, half] -> [B, C, out_size]
    return jnp.swapaxes(out_chunks, 2, 3).reshape(B, C, out_size)


def decoder_reference(mixture_w, est_mask, weight, bias, basic_signal):
    """Pure-JAX reference mirroring the PyTorch forward (incl. overlap_and_add)."""
    source_w = mixture_w[:, None, :, :] * est_mask            # [B,C,N,T]
    est_source = jnp.swapaxes(source_w, 2, 3)                 # [B,C,T,N]
    est_source = est_source @ weight.T + bias                 # [B,C,T,L]
    B, C, T, L = est_source.shape
    step = basic_signal // 2
    out_size = step * (T - 1) + L
    out = jnp.zeros((B, C, out_size), est_source.dtype)
    for t in range(T):
        out = out.at[:, :, t * step: t * step + L].add(est_source[:, :, t, :])
    return out


if __name__ == "__main__":
    B, C = 2, 2
    feature_dim = 32       # N
    basic_signal = 16      # L

    key = jax.random.PRNGKey(0)
    k1, k2, k3, k4 = jax.random.split(key, 4)

    # deterministic nn.Linear-style init: U(-1/sqrt(fan_in), 1/sqrt(fan_in))
    bound = 1.0 / math.sqrt(feature_dim)
    weight = jax.random.uniform(
        k3, (basic_signal, feature_dim), minval=-bound, maxval=bound, dtype=jnp.float32
    )
    bias = jax.random.uniform(
        k4, (basic_signal,), minval=-bound, maxval=bound, dtype=jnp.float32
    )

    # -- case 1: small T -> single-tile regime (matches module's tiny example) --
    T = 8
    mixture_w = jax.random.normal(k1, (B, feature_dim, T), dtype=jnp.float32)
    est_mask = jax.random.uniform(k2, (B, C, feature_dim, T), dtype=jnp.float32)
    out = jax.block_until_ready(
        decoder_forward(mixture_w, est_mask, weight, bias, basic_signal))
    ref = decoder_reference(mixture_w, est_mask, weight, bias, basic_signal)
    assert out.shape == ref.shape, (out.shape, ref.shape)
    assert jnp.allclose(out, ref, atol=1e-4, rtol=1e-4), float(jnp.max(jnp.abs(out - ref)))

    # -- case 2: T-tiled grid with half-frame carry; T % t_tile == 0 exercises the
    #    extra tail tile + clamped input index map --
    T = 384
    k5, k6 = jax.random.split(k1)
    mixture_w = jax.random.normal(k5, (B, feature_dim, T), dtype=jnp.float32)
    est_mask = jax.random.uniform(k6, (B, C, feature_dim, T), dtype=jnp.float32)
    out = jax.block_until_ready(
        decoder_forward(mixture_w, est_mask, weight, bias, basic_signal, t_tile=128))
    ref = decoder_reference(mixture_w, est_mask, weight, bias, basic_signal)
    assert out.shape == ref.shape, (out.shape, ref.shape)
    assert jnp.allclose(out, ref, atol=1e-4, rtol=1e-4), float(jnp.max(jnp.abs(out - ref)))

    # -- case 3: ragged final tile (T % t_tile != 0) with bf16 est_mask input --
    T = 300
    k7, k8 = jax.random.split(k2)
    mixture_w = jax.random.normal(k7, (B, feature_dim, T), dtype=jnp.float32)
    est_mask = jax.random.uniform(k8, (B, C, feature_dim, T), dtype=jnp.float32)
    ref = decoder_reference(mixture_w, est_mask, weight, bias, basic_signal)
    out = jax.block_until_ready(
        decoder_forward(mixture_w, est_mask.astype(jnp.bfloat16), weight, bias,
                        basic_signal, t_tile=128))
    assert out.shape == ref.shape, (out.shape, ref.shape)
    assert jnp.allclose(out, ref, atol=5e-2, rtol=5e-2), float(jnp.max(jnp.abs(out - ref)))

    print("KERNEL_OK")
</pallas_src>

<mosaic_0001>
module attributes {stable_mosaic.version = 11 : i64} {
  func.func @_decoder_kernel(%arg0: i32, %arg1: i32, %arg2: memref<1x32x8xf32, #tpu.memory_space<vmem>>, %arg3: memref<1x2x32x8xf32, #tpu.memory_space<vmem>>, %arg4: memref<16x32xf32, #tpu.memory_space<vmem>>, %arg5: memref<16x1xf32, #tpu.memory_space<vmem>>, %arg6: memref<1x2x8x9xf32, #tpu.memory_space<vmem>>, %arg7: memref<2x8x1xf32, #tpu.memory_space<vmem>>) attributes {dimension_semantics = [#tpu.dimension_semantics<parallel>, #tpu.dimension_semantics<arbitrary>], iteration_bounds = array<i64: 2, 1>, scalar_prefetch = 0 : i64, scratch_operands = 1 : i64, tpu.core_type = #tpu.core_type<tc>, window_params = [{transform_indices = @transform_0, window_bounds = array<i64: 1, 32, 8>}, {transform_indices = @transform_1, window_bounds = array<i64: 1, 2, 32, 8>}, {pipeline_mode = #tpu.pipeline_mode<synchronous>, transform_indices = @transform_2, window_bounds = array<i64: 16, 32>}, {pipeline_mode = #tpu.pipeline_mode<synchronous>, transform_indices = @transform_3, window_bounds = array<i64: 16, 1>}, {transform_indices = @transform_4, window_bounds = array<i64: 1, 2, 8, 9>}]} {
    %c0_i32 = arith.constant 0 : i32
    %0 = arith.cmpi eq, %arg1, %c0_i32 : i32
    %1 = arith.extui %0 : i1 to i32
    %c0_i32_0 = arith.constant 0 : i32
    %2 = arith.cmpi ne, %1, %c0_i32_0 : i32
    scf.if %2 {
      %cst_43 = arith.constant 0.000000e+00 : f32
      %85 = vector.broadcast %cst_43 : f32 to vector<2x8x1xf32>
      %c0_44 = arith.constant 0 : index
      %c0_45 = arith.constant 0 : index
      %c0_46 = arith.constant 0 : index
      %86 = vector.load %arg7[%c0_44, %c0_45, %c0_46] : memref<2x8x1xf32, #tpu.memory_space<vmem>>, vector<2x8x1xf32>
      tpu.vector_store %arg7[%c0_44, %c0_45, %c0_46], %85 {strides = array<i32>} : memref<2x8x1xf32, #tpu.memory_space<vmem>>, vector<2x8x1xf32>,
    } else {
    }
    %c0 = arith.constant 0 : index
    %c0_1 = arith.constant 0 : index
    %3 = vector.load %arg4[%c0, %c0_1] : memref<16x32xf32, #tpu.memory_space<vmem>>, vector<16x32xf32>
    %c0_2 = arith.constant 0 : index
    %c0_3 = arith.constant 0 : index
    %4 = vector.load %arg5[%c0_2, %c0_3] : memref<16x1xf32, #tpu.memory_space<vmem>>, vector<16x1xf32>
    %5 = vector.extract_strided_slice %4 {offsets = [0, 0], sizes = [8, 1], strides = [1, 1]} : vector<16x1xf32> to vector<8x1xf32>
    %6 = vector.extract_strided_slice %4 {offsets = [8, 0], sizes = [8, 1], strides = [1, 1]} : vector<16x1xf32> to vector<8x1xf32>
    %c8_i32 = arith.constant 8 : i32
    %7 = arith.muli %arg1, %c8_i32 : i32
    %8 = tpu.iota {dimensions = array<i32: 1>} : vector<1x8xi32>
    %9 = vector.broadcast %7 : i32 to vector<1x8xi32>
    %10 = arith.addi %9, %8 : vector<1x8xi32>
    %c8_i32_4 = arith.constant 8 : i32
    %11 = vector.broadcast %c8_i32_4 : i32 to vector<1x8xi32>
    %12 = arith.cmpi slt, %10, %11 : vector<1x8xi32>
    %13 = tpu.iota {dimensions = array<i32: 1>} : vector<1x9xi32>
    %14 = vector.broadcast %7 : i32 to vector<1x9xi32>
    %15 = arith.addi %14, %13 : vector<1x9xi32>
    %c8_i32_5 = arith.constant 8 : i32
    %16 = vector.broadcast %c8_i32_5 : i32 to vector<1x9xi32>
    %17 = arith.cmpi slt, %15, %16 : vector<1x9xi32>
    %cst = arith.constant 0.000000e+00 : f32
    %18 = vector.shape_cast %17 : vector<1x9xi1> to vector<1x9xi1>
    %19 = vector.broadcast %18 : vector<1x9xi1> to vector<8x9xi1>
    %20 = vector.shape_cast %5 : vector<8x1xf32> to vector<8x1xf32>
    %21 = vector.broadcast %20 : vector<8x1xf32> to vector<8x9xf32>
    %22 = vector.broadcast %cst : f32 to vector<8x9xf32>
    %23 = arith.select %19, %21, %22 : vector<8x9xi1>, vector<8x9xf32>
    %c1_i32 = arith.constant 1 : i32
    %24 = vector.broadcast %c1_i32 : i32 to vector<1x9xi32>
    %25 = arith.cmpi sge, %15, %24 : vector<1x9xi32>
    %c8_i32_6 = arith.constant 8 : i32
    %26 = vector.broadcast %c8_i32_6 : i32 to vector<1x9xi32>
    %27 = arith.cmpi sle, %15, %26 : vector<1x9xi32>
    %28 = arith.andi %25, %27 : vector<1x9xi1>
    %cst_7 = arith.constant 0.000000e+00 : f32
    %29 = vector.shape_cast %28 : vector<1x9xi1> to vector<1x9xi1>
    %30 = vector.broadcast %29 : vector<1x9xi1> to vector<8x9xi1>
    %31 = vector.shape_cast %6 : vector<8x1xf32> to vector<8x1xf32>
    %32 = vector.broadcast %31 : vector<8x1xf32> to vector<8x9xf32>
    %33 = vector.broadcast %cst_7 : f32 to vector<8x9xf32>
    %34 = arith.select %30, %32, %33 : vector<8x9xi1>, vector<8x9xf32>
    %35 = arith.addf %23, %34 : vector<8x9xf32>
    %c0_8 = arith.constant 0 : index
    %c0_9 = arith.constant 0 : index
    %c0_10 = arith.constant 0 : index
    %36 = vector.load %arg2[%c0_8, %c0_9, %c0_10] : memref<1x32x8xf32, #tpu.memory_space<vmem>>, vector<1x32x8xf32>
    %37 = vector.shape_cast %36 : vector<1x32x8xf32> to vector<32x8xf32>
    %cst_11 = arith.constant 0.000000e+00 : f32
    %38 = vector.broadcast %cst_11 : f32 to vector<8x1xf32>
    %c0_12 = arith.constant 0 : index
    %c0_13 = arith.constant 0 : index
    %c0_14 = arith.constant 0 : index
    %c0_15 = arith.constant 0 : index
    %39 = vector.load %arg3[%c0_12, %c0_13, %c0_14, %c0_15] : memref<1x2x32x8xf32, #tpu.memory_space<vmem>>, vector<1x1x32x8xf32>
    %40 = vector.shape_cast %39 : vector<1x1x32x8xf32> to vector<32x8xf32>
    %41 = arith.mulf %40, %37 : vector<32x8xf32>
    %cst_16 = arith.constant dense<0.000000e+00> : vector<16x8xf32>
    %42 = tpu.matmul %3, %41, %cst_16 {dimension_numbers = #tpu.dot_dimension_numbers<[1], [0], [0], [1], [0, 0, 1, 1], [], []>} : vector<16x32xf32>, vector<32x8xf32>, vector<16x8xf32> -> vector<16x8xf32>
    %cst_17 = arith.constant 0.000000e+00 : f32
    %43 = vector.shape_cast %12 : vector<1x8xi1> to vector<1x8xi1>
    %44 = vector.broadcast %43 : vector<1x8xi1> to vector<16x8xi1>
    %45 = vector.broadcast %cst_17 : f32 to vector<16x8xf32>
    %46 = arith.select %44, %42, %45 : vector<16x8xi1>, vector<16x8xf32>
    %47 = vector.extract_strided_slice %46 {offsets = [0, 0], sizes = [8, 8], strides = [1, 1]} : vector<16x8xf32> to vector<8x8xf32>
    %48 = vector.extract_strided_slice %46 {offsets = [8, 0], sizes = [8, 8], strides = [1, 1]} : vector<16x8xf32> to vector<8x8xf32>
    %c0_18 = arith.constant 0 : index
    %c0_19 = arith.constant 0 : index
    %c0_20 = arith.constant 0 : index
    %49 = vector.load %arg7[%c0_18, %c0_19, %c0_20] : memref<2x8x1xf32, #tpu.memory_space<vmem>>, vector<1x8x1xf32>
    %50 = vector.shape_cast %49 : vector<1x8x1xf32> to vector<8x1xf32>
    %51 = tpu.concatenate %47, %38 in 1 : vector<8x8xf32>, vector<8x1xf32> -> vector<8x9xf32>
    %52 = tpu.concatenate %50, %48 in 1 : vector<8x1xf32>, vector<8x8xf32> -> vector<8x9xf32>
    %53 = arith.addf %51, %52 : vector<8x9xf32>
    %54 = arith.addf %53, %35 : vector<8x9xf32>
    %c0_21 = arith.constant 0 : index
    %c0_22 = arith.constant 0 : index
    %c0_23 = arith.constant 0 : index
    %c0_24 = arith.constant 0 : index
    %55 = vector.load %arg6[%c0_21, %c0_22, %c0_23, %c0_24] : memref<1x2x8x9xf32, #tpu.memory_space<vmem>>, vector<1x1x8x9xf32>
    %56 = vector.shape_cast %55 : vector<1x1x8x9xf32> to vector<8x9xf32>
    %57 = vector.shape_cast %54 : vector<8x9xf32> to vector<1x1x8x9xf32>
    tpu.vector_store %arg6[%c0_21, %c0_22, %c0_23, %c0_24], %57 {strides = array<i32>} : memref<1x2x8x9xf32, #tpu.memory_space<vmem>>, vector<1x1x8x9xf32>,
    %58 = vector.extract_strided_slice %48 {offsets = [0, 7], sizes = [8, 1], strides = [1, 1]} : vector<8x8xf32> to vector<8x1xf32>
    %c0_25 = arith.constant 0 : index
    %c0_26 = arith.constant 0 : index
    %c0_27 = arith.constant 0 : index
    %59 = vector.load %arg7[%c0_25, %c0_26, %c0_27] : memref<2x8x1xf32, #tpu.memory_space<vmem>>, vector<1x8x1xf32>
    %60 = vector.shape_cast %59 : vector<1x8x1xf32> to vector<8x1xf32>
    %61 = vector.shape_cast %58 : vector<8x1xf32> to vector<1x8x1xf32>
    tpu.vector_store %arg7[%c0_25, %c0_26, %c0_27], %61 {strides = array<i32>} : memref<2x8x1xf32, #tpu.memory_space<vmem>>, vector<1x8x1xf32>,
    %c0_28 = arith.constant 0 : index
    %c1 = arith.constant 1 : index
    %c0_29 = arith.constant 0 : index
    %c0_30 = arith.constant 0 : index
    %62 = vector.load %arg3[%c0_28, %c1, %c0_29, %c0_30] : memref<1x2x32x8xf32, #tpu.memory_space<vmem>>, vector<1x1x32x8xf32>
    %63 = vector.shape_cast %62 : vector<1x1x32x8xf32> to vector<32x8xf32>
    %64 = arith.mulf %63, %37 : vector<32x8xf32>
    %cst_31 = arith.constant dense<0.000000e+00> : vector<16x8xf32>
    %65 = tpu.matmul %3, %64, %cst_31 {dimension_numbers = #tpu.dot_dimension_numbers<[1], [0], [0], [1], [0, 0, 1, 1], [], []>} : vector<16x32xf32>, vector<32x8xf32>, vector<16x8xf32> -> vector<16x8xf32>
    %cst_32 = arith.constant 0.000000e+00 : f32
    %66 = vector.shape_cast %12 : vector<1x8xi1> to vector<1x8xi1>
    %67 = vector.broadcast %66 : vector<1x8xi1> to vector<16x8xi1>
    %68 = vector.broadcast %cst_32 : f32 to vector<16x8xf32>
    %69 = arith.select %67, %65, %68 : vector<16x8xi1>, vector<16x8xf32>
    %70 = vector.extract_strided_slice %69 {offsets = [0, 0], sizes = [8, 8], strides = [1, 1]} : vector<16x8xf32> to vector<8x8xf32>
    %71 = vector.extract_strided_slice %69 {offsets = [8, 0], sizes = [8, 8], strides = [1, 1]} : vector<16x8xf32> to vector<8x8xf32>
    %c1_33 = arith.constant 1 : index
    %c0_34 = arith.constant 0 : index
    %c0_35 = arith.constant 0 : index
    %72 = vector.load %arg7[%c1_33, %c0_34, %c0_35] : memref<2x8x1xf32, #tpu.memory_space<vmem>>, vector<1x8x1xf32>
    %73 = vector.shape_cast %72 : vector<1x8x1xf32> to vector<8x1xf32>
    %74 = tpu.concatenate %70, %38 in 1 : vector<8x8xf32>, vector<8x1xf32> -> vector<8x9xf32>
    %75 = tpu.concatenate %73, %71 in 1 : vector<8x1xf32>, vector<8x8xf32> -> vector<8x9xf32>
    %76 = arith.addf %74, %75 : vector<8x9xf32>
    %77 = arith.addf %76, %35 : vector<8x9xf32>
    %c0_36 = arith.constant 0 : index
    %c1_37 = arith.constant 1 : index
    %c0_38 = arith.constant 0 : index
    %c0_39 = arith.constant 0 : index
    %78 = vector.load %arg6[%c0_36, %c1_37, %c0_38, %c0_39] : memref<1x2x8x9xf32, #tpu.memory_space<vmem>>, vector<1x1x8x9xf32>
    %79 = vector.shape_cast %78 : vector<1x1x8x9xf32> to vector<8x9xf32>
    %80 = vector.shape_cast %77 : vector<8x9xf32> to vector<1x1x8x9xf32>
    tpu.vector_store %arg6[%c0_36, %c1_37, %c0_38, %c0_39], %80 {strides = array<i32>} : memref<1x2x8x9xf32, #tpu.memory_space<vmem>>, vector<1x1x8x9xf32>,
    %81 = vector.extract_strided_slice %71 {offsets = [0, 7], sizes = [8, 1], strides = [1, 1]} : vector<8x8xf32> to vector<8x1xf32>
    %c1_40 = arith.constant 1 : index
    %c0_41 = arith.constant 0 : index
    %c0_42 = arith.constant 0 : index
    %82 = vector.load %arg7[%c1_40, %c0_41, %c0_42] : memref<2x8x1xf32, #tpu.memory_space<vmem>>, vector<1x8x1xf32>
    %83 = vector.shape_cast %82 : vector<1x8x1xf32> to vector<8x1xf32>
    %84 = vector.shape_cast %81 : vector<8x1xf32> to vector<1x8x1xf32>
    tpu.vector_store %arg7[%c1_40, %c0_41, %c0_42], %84 {strides = array<i32>} : memref<2x8x1xf32, #tpu.memory_space<vmem>>, vector<1x8x1xf32>,
    return
  }
  func.func @transform_0(%arg0: i32, %arg1: i32) -> (i32, i32, i32) {
    %c0_i32 = arith.constant 0 : i32
    %0 = arith.minsi %arg1, %c0_i32 : i32
    %c0_i32_0 = arith.constant 0 : i32
    %c0_i32_1 = arith.constant 0 : i32
    return %arg0, %c0_i32_0, %0 : i32, i32, i32
  }
  func.func @transform_1(%arg0: i32, %arg1: i32) -> (i32, i32, i32, i32) {
    %c0_i32 = arith.constant 0 : i32
    %0 = arith.minsi %arg1, %c0_i32 : i32
    %c0_i32_0 = arith.constant 0 : i32
    %c0_i32_1 = arith.constant 0 : i32
    %c0_i32_2 = arith.constant 0 : i32
    return %arg0, %c0_i32_0, %c0_i32_1, %0 : i32, i32, i32, i32
  }
  func.func @transform_2(%arg0: i32, %arg1: i32) -> (i32, i32) {
    %c0_i32 = arith.constant 0 : i32
    %c0_i32_0 = arith.constant 0 : i32
    %c0_i32_1 = arith.constant 0 : i32
    return %c0_i32, %c0_i32_0 : i32, i32
  }
  func.func @transform_3(%arg0: i32, %arg1: i32) -> (i32, i32) {
    %c0_i32 = arith.constant 0 : i32
    %c0_i32_0 = arith.constant 0 : i32
    %c0_i32_1 = arith.constant 0 : i32
    return %c0_i32, %c0_i32_0 : i32, i32
  }
  func.func @transform_4(%arg0: i32, %arg1: i32) -> (i32, i32, i32, i32) {
    %c0_i32 = arith.constant 0 : i32
    %c0_i32_0 = arith.constant 0 : i32
    %c0_i32_1 = arith.constant 0 : i32
    return %arg0, %c0_i32, %c0_i32_0, %arg1 : i32, i32, i32, i32
  }
}

</mosaic_0001>

<bundles_post_ra>
// kernel: tpu_custom_call.1
= control target key start
LH: loop header
LB: loop body
LE: loop exit
PB: predicated region body
PF: predicated region fallthrough
CT: control target
= control target key end

     0   :  { %9 = vsyncpa [#allocation4], 0  ;;  %s874_s0 = inlined_call_operand.vmem [shape: f32[2,32,8], index: 0, kind: input, shape index: {}]   ;;  %s875_s1 = inlined_call_operand.vmem [shape: f32[2,2,32,8], index: 1, kind: input, shape index: {}]   ;;  %s876_s2 = inlined_call_operand.vmem [shape: f32[16,32], index: 2, kind: input, shape index: {}]   ;;  %s877_s3 = inlined_call_operand.vmem [shape: f32[16,1], index: 3, kind: input, shape index: {}]   ;;  %s878_s4 = inlined_call_operand.hbm [shape: f32[2,2,8,9], index: 4, kind: output, shape index: {}]  }
   0x1   :  { %11 = vsyncpa [#allocation4 + $0x1], 0  ;;  %s749_s15 = smov 0   ;;  %s751_s16 = smov 0  }
   0x2   :  { %s753_s17 = smov 0   ;;  %s755_s18 = smov 0  }
   0x3   :  { %s757_s19 = smov 0   ;;  %s759_s20 = smov 0  }
   0x4 LB: > { %s541_s21 = sadd.s32 4294967295, %s716_s20   ;;  %s542_s22 = sadd.s32 4294967294, %s716_s20   ;;  %s716_s20 = sphi %s759_s20, %s17_s20   ;;  %s712_s19 = sphi %s757_s19, %s885_s19   ;;  %s708_s18 = sphi %s755_s18, %s884_s18   ;;  %s704_s17 = sphi %s753_s17, %s883_s17   ;;  %s700_s16 = sphi %s751_s16, %s882_s16   ;;  %s696_s15 = sphi %s749_s15, %s881_s15  }
   0x5   : > { %s29_s23 = sadd.s32 1, %s712_s19  ;;  %s144_s24 = sadd.s32 1, %s704_s17 }
   0x6   : > { %p31_p0 = scmp.ge.s32.totalorder %s29_s23, 2  ;;  %p154_p1 = scmp.ne.s32.totalorder %s704_s17, %s700_s16 }
   0x7   : > { %p155_p2 = scmp.eq.s32.totalorder %s541_s21, 1  ;;  %p160_p3 = scmp.ne.s32.totalorder %s700_s16, %s696_s15 }
   0x8   : > { %s887_s23 = smov (%p31_p0, %s29_s23), 0  ;;  %p161_p5 = scmp.eq.s32.totalorder %s542_s22, 1 }
   0x9   : > { %p789_p4 = por %p155_p2, %p154_p1  ;;  %s139_s26 = ssub.s32 %s712_s19, %s887_s23 }
   0xa   : > { %p545_p6 = scmp.ge.s32.totalorder %s716_s20, 1  ;;  %p142_p7 = scmp.eq.s32.totalorder %s139_s26, 0 }
   0xb   : > { %p796_p8 = por %p161_p5, %p160_p3  ;;  %p215_p9 = scmp.lt.s32.totalorder %s716_s20, 3 }
   0xc   : > { %s802_s28 = scalar_select %p142_p7, %s704_s17, %s144_s24  }
   0xd   : > { %p216_p10 = pnand %p545_p6, %p215_p9 }
   0xe   : > { %p258_p11 = scmp.lt.s32.totalorder (!%p216_p10), %s708_s18, 1  ;;  %s720_s30 = smov (!%p216_p10), 121  }
   0xf   : > { %219 = sbr.rel (%p216_p10) target bundleno = 300 (0x12c), region = 36  ;;  %s567_s8 = sshll.u32 (!%p216_p10), %s708_s18, 4 }
  0x10   : > { %s441_s11 = scalar_lea.hbm (!%p216_p10), %s878_s4, %s567_s8  ;;  %s658_s29 = scalar_lea.hbm (!%p216_p10), %s878_s4, 32 }
  0x11   : > { %s444_s14 = sshll.u32 (!%p216_p10), %s441_s11, 4  ;;  %s445_s14 = int_to_ptr.hbm [resolvable:$true] %s444_s14 }
  0x12   : > { %s652_s21 = sshra.s32 (!%p216_p10), %s445_s14, 4  ;;  %s653_s21 = int_to_ptr.hbm [resolvable:$true] %s652_s21 }
  0x13   : > { %s654_s22 = scalar_lea.hbm (!%p216_p10), %s653_s21, 16  ;;  %p659_p1 = scmp.lt.s32.totalorder (!%p216_p10), %s653_s21, %s878_s4 }
  0x14   : > { %v289_v0 = vld [vmem:[%s877_s3] sm:$0xff]  ;;  %v718_v1 = vmov 0   ;;  %s259_s5 = scalar_select %p258_p11, %s708_s18, 1  ;;  %v288_v21 = vld [vmem:[%s876_s2 + $0x8] sm:$0xff]  ;;  %vm329_vm0 = vcmask 261120   ;;  %vm284_vm1 = vcmask 7168   ;;  %v292_v26 = vlaneseq }
  0x15   : > { %637 = vset.pattern.permute.xlu0 %v718_v1  ;;  %v287_v23 = vld [vmem:[%s876_s2] sm:$0xff]  ;;  %v290_v24 = vld [vmem:[%s877_s3 + $0x8] sm:$0xff]  ;;  %v719_v25 = vmov 0.0   ;;  %vm362_vm6 = vcmask 64512   ;;  %vm372_vm7 = vcmask 72704   ;;  %p655_p12 = scmp.ne.s32.totalorder %s653_s21, %s654_s22  ;;  %p660_p2 = scmp.lt.s32.totalorder %s658_s29, %s654_s22 }
  0x16   : > { %301 = vperm.xlu0 %637, %v289_v0   ;;  %s565_s6 = sshll.u32 %s259_s5, 5  ;;  %s566_s7 = sshll.u32 %s259_s5, 6  ;;  %285 = vst.msk [vmem:[#allocation2] sm:$0xff] %vm284_vm1, %v719_v25  ;;  %v293_v27 = vand.u32 127, %v292_v26 }
  0x17   : > { %s265_s10 = scalar_lea.vmem %s874_s0, %s565_s6  ;;  %s277_s13 = scalar_lea.vmem %s875_s1, %s566_s7  ;;  %286 = vst.msk [vmem:[#allocation2 + $0x8] sm:$0xff] %vm284_vm1, %v719_v25 }
  0x18   : > { %v320_v2 = vld [vmem:[%s265_s10 + $0x18] sm:$0xff]  ;;  %v319_v4 = vld [vmem:[%s265_s10 + $0x10] sm:$0xff]  ;;  %v318_v7 = vld [vmem:[%s265_s10 + $0x8] sm:$0xff]  ;;  %vm296_vm2 = vcmp.lt.s32.totalorder %v293_v27, 8  ;;  %s721_s5 = smov 1   ;;  %vm305_vm3 = vcmp.ge.s32.totalorder %v293_v27, 1  ;;  %p656_p13 = pnand %p655_p12, %p789_p4 }
  0x19   : > { %v324_v3 = vld [vmem:[%s277_s13 + $0x18] sm:$0xff]  ;;  %v323_v6 = vld [vmem:[%s277_s13 + $0x10] sm:$0xff]  ;;  %v322_v8 = vld [vmem:[%s277_s13 + $0x8] sm:$0xff]  ;;  %vm306_vm4 = vcmp.le.s32.totalorder %v293_v27, 8  ;;  %s253_s6 = sand.u32 1, %s700_s16   ;;  %p661_p3 = por %p660_p2, %p659_p1 }
  0x1a   : > { %v328_v5 = vmul.f32 %v324_v3, %v320_v2  ;;  %v327_v9 = vmul.f32 %v323_v6, %v319_v4  ;;  %v317_v10 = vld [vmem:[%s265_s10] sm:$0xff]  ;;  %v556_v12 = vld [vmem:[%s277_s13 + $0x38] sm:$0xff]  ;;  %v326_v13 = vmul.f32 %v322_v8, %v318_v7  ;;  %v555_v15 = vld [vmem:[%s277_s13 + $0x30] sm:$0xff]  ;;  %s546_s7 = sshll.u32 %s253_s6, 4  ;;  %s429_s18 = scalar_lea.sflag [#allocation4], %s253_s6 }
  0x1b   : > { %v321_v11 = vld [vmem:[%s277_s13] sm:$0xff]  ;;  %v386_v14 = vmul.f32 %v556_v12, %v320_v2  ;;  %v554_v16 = vld [vmem:[%s277_s13 + $0x28] sm:$0xff]  ;;  %v385_v17 = vmul.f32 %v555_v15, %v319_v4  ;;  %vm307_vm5 = vmand %vm305_vm3, %vm306_vm4  ;;  %s255_s12 = scalar_lea.vmem [#allocation3], %s546_s7  ;;  %p657_p0 = pneg %p656_p13 }
  0x1c   : > { %568 = vmatpush.msra.mxu2 %v328_v5  ;;  %348 = vmatpush.msra.mxu0 %v328_v5  ;;  %v553_v18 = vld [vmem:[%s277_s13 + $0x20] sm:$0xff]  ;;  %v325_v19 = vmul.f32 %v321_v11, %v317_v10  ;;  %v384_v20 = vmul.f32 %v554_v16, %v318_v7  ;;  %s442_s13 = sshll.u32 %s255_s12, 4  ;;  %s443_s13 = int_to_ptr.vmem [resolvable:$true] %s442_s13 }
  0x1d   : > { %572 = vmatpush.msra.mxu3 %v386_v14  ;;  %399 = vmatpush.msra.mxu1 %v386_v14  ;;  %v383_v22 = vmul.f32 %v553_v18, %v317_v10  ;;  %v361_v32 = vld [vmem:[#allocation2] sm:$0xff]  ;;  %p662_p5 = pnand %p661_p3, %p657_p0 }
  0x1e   : > { %569 = vmatpush.msra.mxu2 %v327_v9  ;;  %349 = vmatpush.msra.mxu0 %v327_v9  ;;  %v413_v34 = vld [vmem:[#allocation2 + $0x8] sm:$0xff] }
  0x1f   : > { %573 = vmatpush.msra.mxu3 %v385_v17  ;;  %400 = vmatpush.msra.mxu1 %v385_v17 }
  0x20   : > { %570 = vmatpush.msra.mxu2 %v326_v13  ;;  %350 = vmatpush.msra.mxu0 %v326_v13 }
  0x21   : > { %574 = vmatpush.msra.mxu3 %v384_v20  ;;  %401 = vmatpush.msra.mxu1 %v384_v20 }
  0x22   : > { %571 = vmatpush.msra.mxu2 %v325_v19  ;;  %351 = vmatpush.msra.mxu0 %v325_v19 }
  0x23   : > { %552 = vmatmul.msk.f32.vlgmr.msra.gmra.mxu2 %vm329_vm0, %v288_v21  ;;  %575 = vmatpush.msra.mxu3 %v383_v22 }
  0x24   : > { %551 = vmatmul.msk.f32.vlgmr.msra.gmra.mxu0 %vm329_vm0, %v287_v23  ;;  %558 = vmatmul.msk.f32.vlgmr.msra.gmra.mxu3 %vm329_vm0, %v288_v21 }
  0x25   : > { %402 = vmatpush.msra.mxu1 %v383_v22  ;;  %312 = vperm.xlu0 %637, %v290_v24  }
  0x26   : > { %557 = vmatmul.msk.f32.vlgmr.msra.gmra.mxu1 %vm329_vm0, %v287_v23 }
  0x88   : > { %v302_v36 = vpop.permute.xlu0 %301 }
  0x89   : > { %v304_v40 = vsel %vm296_vm2, %v302_v36, 0.0 }
  0x97   : > { %v313_v38 = vpop.permute.xlu0 %312 }
  0x98   : > { %v315_v41 = vsel %vm307_vm5, %v313_v38, 0.0 }
  0x99   : > { %v316_v43 = vadd.f32 %v315_v41, %v304_v40 }
  0xa1   : > { %v353_v37 = vpop.f32.mrf.mxu0 }
  0xa2   : > { %v359_v39 = vsel %vm296_vm2, %v353_v37, 0.0 }
  0xa3   : > { %v363_v42 = vsel %vm362_vm6, %v359_v39, 0.0  ;;  %v404_v46 = vpop.f32.mrf.mxu1 }
  0xa4   : > { %v410_v49 = vsel %vm296_vm2, %v404_v46, 0.0 }
  0xa5   : > { %v414_v50 = vsel %vm362_vm6, %v410_v49, 0.0 }
  0xa6   : > { %v356_v28 = vpop.f32.mrf.mxu2 }
  0xa7   : > { %v360_v29 = vsel %vm296_vm2, %v356_v28, 0.0  ;;  %v407_v30 = vpop.f32.mrf.mxu3 }
  0xa8   : > { %374 = vrot.lane.b32.xlu2 %v360_v29, %s720_s30  ;;  %365 = vrot.lane.b32.xlu1 %v360_v29, %s721_s5  ;;  %v411_v31 = vsel %vm296_vm2, %v407_v30, 0.0 }
  0xb0   : > { %424 = vrot.lane.b32.xlu2 %v411_v31, %s720_s30  ;;  %416 = vrot.lane.b32.xlu1 %v411_v31, %s721_s5 }
 0x102   : > { %v375_v33 = vpop.permute.xlu2 %374 }
 0x103   : > { %377 = vst.msk [vmem:[#allocation2] sm:$0xff] %vm284_vm1, %v375_v33 }
 0x10a   : > { %v425_v35 = vpop.permute.xlu2 %424 }
 0x10b   : > { %427 = vst.msk [vmem:[#allocation2 + $0x8] sm:$0xff] %vm284_vm1, %v425_v35 }
 0x11a   : > { %v366_v44 = vpop.permute.xlu1 %365 }
 0x11b   : > { %v369_v45 = vsel %vm284_vm1, %v361_v32, %v366_v44 }
 0x11c   : > { %v370_v47 = vadd.f32 %v369_v45, %v363_v42 }
 0x11e   : > { %v371_v48 = vadd.f32 %v370_v47, %v316_v43 }
 0x120   : > { %373 = vst.msk [vmem:[%s255_s12] sm:$0xff] %vm372_vm7, %v371_v48 }
 0x122   : > { %v417_v51 = vpop.permute.xlu1 %416 }
 0x123   : > { %v419_v52 = vsel %vm284_vm1, %v413_v34, %v417_v51 }
 0x124   : > { %v420_v53 = vadd.f32 %v419_v52, %v414_v50 }
 0x126   : > { %v421_v54 = vadd.f32 %v420_v53, %v316_v43 }
 0x128   : > { %559 = vst.msk [vmem:[%s255_s12 + $0x8] sm:$0xff] %vm372_vm7, %v421_v54 }
 0x129   : > { %665 = shalt.err (!%p662_p5)
}
 0x12a   : > { %s722_s6 = smov 128   ;;  %s723_s7 = smov 8  }
 0x12b   : > { %576 = dma.vmem_to_hbm [thread:$0]  (%p789_p4), %s443_s13, 256, %s445_s14, %s429_s18, %s722_s6, %s722_s6, %s723_s7  }
 0x12c PF: > { %p582_p6 = scmp.ge.s32.totalorder %s716_s20, 2  ;;  %s459_s8 = sand.u32 1, %s696_s15  }
 0x12d   : > { %s460_s9 = scalar_lea.sflag [#allocation4], %s459_s8 }
 0x12e   : > { %p579_p7 = pnand %p582_p6, %p796_p8 }
 0x130   : > { %p580_p9 = pneg %p579_p7 }
 0x132   : > { %691 = dma.done.wait (%p580_p9), %s460_s9, 256  }
 0x133   : > { %693 = vsyncadd (%p580_p9), %s460_s9, 4294967040  ;;  %s17_s20 = sadd.s32 1, %s716_s20   ;;  %s881_s15 = smov %s700_s16 }
 0x134   : > { %p14_p10 = scmp.ge.s32.totalorder %s17_s20, 4   ;;  %s882_s16 = smov %s704_s17 }
 0x135   : > { %s883_s17 = smov %s802_s28  ;;  %s884_s18 = smov %s712_s19 }
 0x136   : > { %s885_s19 = smov %s887_s23  ;;  %16 = sbr.rel (!%p14_p10) target bundleno = 4 (0x4), region = 81 }
 0x13b   :  { %466 = vsyncpa [#allocation4], 1 }
 0x13c   :  { %468 = vsyncpa [#allocation4 + $0x1], 1 }

</bundles_post_ra>
